<compile_context>
chip_gen: v7x
topology: tpu7x:2x2x1
jax: 0.10.0
libtpu: 0.0.40
codegen_flags: <defaults>
</compile_context>

<pallas_src>
import numpy as np
import jax
import jax.numpy as jnp
from jax.experimental import pallas as pl
from jax.experimental.pallas import tpu as pltpu

HIDDEN = 256


def _round_up(x, m):
    return ((x + m - 1) // m) * m


def value_kernel(x_ref, w1_ref, b1_ref, w2_ref, b2_ref, w3_ref, b3_ref, out_ref):
    # fc1 + relu  (bf16 MXU inputs, f32 accumulation; f32 VPU epilogue)
    h = jnp.dot(x_ref[...].astype(jnp.bfloat16), w1_ref[...],
                preferred_element_type=jnp.float32)
    h = jnp.maximum(h + b1_ref[...], 0.0).astype(jnp.bfloat16)
    # fc2 + relu
    h = jnp.dot(h, w2_ref[...], preferred_element_type=jnp.float32)
    h = jnp.maximum(h + b2_ref[...], 0.0).astype(jnp.bfloat16)
    # fc3: single-lane value head stored narrow (no padded f32 writeback)
    v = jnp.dot(h, w3_ref[...], preferred_element_type=jnp.float32)
    out_ref[...] = (v + b3_ref[...]).astype(out_ref.dtype)


def value_forward(x, params, *, block_batch=1024):
    """x: [B, obs_dim] float32 (or bfloat16).  Returns value [B, 1] float32."""
    w1, b1, w2, b2, w3, b3 = params
    B, obs_dim = x.shape
    obs_pad, hidden = w1.shape

    # Batch tile: sublane multiple (>=8), capped at block_batch, chosen so the
    # grid has >=2 steps whenever the batch allows (v7x megacore sharding).
    b8 = _round_up(max(B, 8), 8)
    tb = min(block_batch, _round_up(pl.cdiv(b8, 2), 8))
    b_pad = _round_up(B, tb)

    # Single wrapper-side pad: batch rows up to the tile multiple, obs columns
    # up to the (zero-row-extended) w1 width.  Padded entries are zero, so the
    # forward pass is unchanged.
    pad_rows, pad_cols = b_pad - B, obs_pad - obs_dim
    if pad_rows or pad_cols:
        x = jnp.pad(x, ((0, pad_rows), (0, pad_cols)))

    grid = (b_pad // tb,)

    flops = 2 * b_pad * (obs_pad * hidden + hidden * hidden + hidden * 1)
    bytes_accessed = (
        b_pad * obs_pad * x.dtype.itemsize          # x in
        + (w1.size + w2.size + w3.size) * 2         # bf16 weights (resident)
        + (b1.size + b2.size + b3.size) * 4         # f32 biases
        + b_pad * 1 * 4                             # narrow value out
    )

    def resident(shape):
        # Grid-invariant operand: single-buffered, stays in VMEM for all steps.
        return pl.BlockSpec(shape, lambda i: (0, 0), pipeline_mode=pl.Buffered(1))

    out = pl.pallas_call(
        value_kernel,
        out_shape=jax.ShapeDtypeStruct((b_pad, 1), jnp.float32),
        grid=grid,
        in_specs=[
            pl.BlockSpec((tb, obs_pad), lambda i: (i, 0)),   # x tile moves
            resident(w1.shape), resident(b1.shape),
            resident(w2.shape), resident(b2.shape),
            resident(w3.shape), resident(b3.shape),
        ],
        out_specs=pl.BlockSpec((tb, 1), lambda i: (i, 0)),
        compiler_params=pltpu.CompilerParams(
            dimension_semantics=("parallel",)),
        cost_estimate=pl.CostEstimate(
            flops=flops, transcendentals=0, bytes_accessed=bytes_accessed),
    )(x, w1, b1, w2, b2, w3, b3)

    return out[:B]   # drop padded batch rows; value head is already 1 lane


def orthogonal_init(key, shape, gain):
    """Orthogonal init matching torch.nn.init.orthogonal_ semantics."""
    rows, cols = shape
    n = max(rows, cols)
    a = jax.random.normal(key, (n, n), dtype=jnp.float32)
    q, r = jnp.linalg.qr(a)
    q = q * jnp.sign(jnp.diag(r))
    return gain * q[:rows, :cols]


def make_params(key, obs_dim, hidden=HIDDEN):
    k1, k2, k3, k4, k5, k6 = jax.random.split(key, 6)
    gain = float(np.sqrt(2.0))
    obs_pad = _round_up(obs_dim, 16)   # bf16 sublane pack
    # PyTorch Linear weight is [out, in]; store transposed [in, out], bf16.
    w1 = orthogonal_init(k1, (hidden, obs_dim), gain).T          # [obs, 256]
    if obs_pad != obs_dim:
        w1 = jnp.pad(w1, ((0, obs_pad - obs_dim), (0, 0)))       # zero rows
    w2 = orthogonal_init(k2, (hidden, hidden), gain).T           # [256, 256]
    w3 = orthogonal_init(k3, (1, hidden), gain).T                # [256, 1]
    # PyTorch default bias: uniform(-1/sqrt(fan_in), 1/sqrt(fan_in)); kept 2D.
    b1 = jax.random.uniform(k4, (1, hidden), jnp.float32,
                            -1.0 / np.sqrt(obs_dim), 1.0 / np.sqrt(obs_dim))
    b2 = jax.random.uniform(k5, (1, hidden), jnp.float32,
                            -1.0 / np.sqrt(hidden), 1.0 / np.sqrt(hidden))
    b3 = jax.random.uniform(k6, (1, 1), jnp.float32,
                            -1.0 / np.sqrt(hidden), 1.0 / np.sqrt(hidden))
    return (w1.astype(jnp.bfloat16), b1,
            w2.astype(jnp.bfloat16), b2,
            w3.astype(jnp.bfloat16), b3)


def reference_forward(x, params):
    """Pure-JAX reference using the same bf16-weight / f32-accumulate math."""
    w1, b1, w2, b2, w3, b3 = params
    obs_dim = x.shape[1]
    h = jnp.maximum(jnp.dot(x.astype(jnp.bfloat16), w1[:obs_dim],
                            preferred_element_type=jnp.float32) + b1, 0.0)
    h = jnp.maximum(jnp.dot(h.astype(jnp.bfloat16), w2,
                            preferred_element_type=jnp.float32) + b2, 0.0)
    return jnp.dot(h.astype(jnp.bfloat16), w3,
                   preferred_element_type=jnp.float32) + b3


if __name__ == "__main__":
    key = jax.random.PRNGKey(0)
    kx, kp = jax.random.split(key)

    batch, obs_dim = 2, 16
    x = jax.random.normal(kx, (batch, obs_dim), dtype=jnp.float32)
    params = make_params(kp, obs_dim)

    value = value_forward(x, params)
    jax.block_until_ready(value)

    ref_value = reference_forward(x, params)
    np.testing.assert_allclose(np.asarray(value), np.asarray(ref_value),
                               rtol=1e-5, atol=1e-4)
    assert value.shape == (batch, 1)

    print("KERNEL_OK")
</pallas_src>

<mosaic_0001>
module attributes {stable_mosaic.version = 11 : i64} {
  func.func @value_kernel(%arg0: i32, %arg1: memref<8x16xf32, #tpu.memory_space<vmem>>, %arg2: memref<16x256xbf16, #tpu.memory_space<vmem>>, %arg3: memref<1x256xf32, #tpu.memory_space<vmem>>, %arg4: memref<256x256xbf16, #tpu.memory_space<vmem>>, %arg5: memref<1x256xf32, #tpu.memory_space<vmem>>, %arg6: memref<256x1xbf16, #tpu.memory_space<vmem>>, %arg7: memref<1x1xf32, #tpu.memory_space<vmem>>, %arg8: memref<8x1xf32, #tpu.memory_space<vmem>>) attributes {dimension_semantics = [#tpu.dimension_semantics<parallel>], iteration_bounds = array<i64: 1>, scalar_prefetch = 0 : i64, scratch_operands = 0 : i64, tpu.core_type = #tpu.core_type<tc>, window_params = [{transform_indices = @transform_0, window_bounds = array<i64: 8, 16>}, {pipeline_mode = #tpu.pipeline_mode<synchronous>, transform_indices = @transform_1, window_bounds = array<i64: 16, 256>}, {pipeline_mode = #tpu.pipeline_mode<synchronous>, transform_indices = @transform_2, window_bounds = array<i64: 1, 256>}, {pipeline_mode = #tpu.pipeline_mode<synchronous>, transform_indices = @transform_3, window_bounds = array<i64: 256, 256>}, {pipeline_mode = #tpu.pipeline_mode<synchronous>, transform_indices = @transform_4, window_bounds = array<i64: 1, 256>}, {pipeline_mode = #tpu.pipeline_mode<synchronous>, transform_indices = @transform_5, window_bounds = array<i64: 256, 1>}, {pipeline_mode = #tpu.pipeline_mode<synchronous>, transform_indices = @transform_6, window_bounds = array<i64: 1, 1>}, {transform_indices = @transform_7, window_bounds = array<i64: 8, 1>}]} {
    %c0 = arith.constant 0 : index
    %c0_0 = arith.constant 0 : index
    %0 = vector.load %arg1[%c0, %c0_0] : memref<8x16xf32, #tpu.memory_space<vmem>>, vector<8x16xf32>
    %1 = arith.truncf %0 : vector<8x16xf32> to vector<8x16xbf16>
    %c0_1 = arith.constant 0 : index
    %c0_2 = arith.constant 0 : index
    %2 = vector.load %arg2[%c0_1, %c0_2] : memref<16x256xbf16, #tpu.memory_space<vmem>>, vector<16x256xbf16>
    %cst = arith.constant dense<0.000000e+00> : vector<8x256xf32>
    %3 = tpu.matmul %1, %2, %cst {dimension_numbers = #tpu.dot_dimension_numbers<[1], [0], [0], [1], [0, 0, 1, 1], [], []>} : vector<8x16xbf16>, vector<16x256xbf16>, vector<8x256xf32> -> vector<8x256xf32>
    %c0_3 = arith.constant 0 : index
    %c0_4 = arith.constant 0 : index
    %4 = vector.load %arg3[%c0_3, %c0_4] : memref<1x256xf32, #tpu.memory_space<vmem>>, vector<1x256xf32>
    %5 = vector.broadcast %4 : vector<1x256xf32> to vector<8x256xf32>
    %6 = arith.addf %3, %5 : vector<8x256xf32>
    %cst_5 = arith.constant 0.000000e+00 : f32
    %7 = vector.broadcast %cst_5 : f32 to vector<8x256xf32>
    %8 = arith.maximumf %6, %7 : vector<8x256xf32>
    %9 = arith.truncf %8 : vector<8x256xf32> to vector<8x256xbf16>
    %c0_6 = arith.constant 0 : index
    %c0_7 = arith.constant 0 : index
    %10 = vector.load %arg4[%c0_6, %c0_7] : memref<256x256xbf16, #tpu.memory_space<vmem>>, vector<256x256xbf16>
    %cst_8 = arith.constant dense<0.000000e+00> : vector<8x256xf32>
    %11 = tpu.matmul %9, %10, %cst_8 {dimension_numbers = #tpu.dot_dimension_numbers<[1], [0], [0], [1], [0, 0, 1, 1], [], []>} : vector<8x256xbf16>, vector<256x256xbf16>, vector<8x256xf32> -> vector<8x256xf32>
    %c0_9 = arith.constant 0 : index
    %c0_10 = arith.constant 0 : index
    %12 = vector.load %arg5[%c0_9, %c0_10] : memref<1x256xf32, #tpu.memory_space<vmem>>, vector<1x256xf32>
    %13 = vector.broadcast %12 : vector<1x256xf32> to vector<8x256xf32>
    %14 = arith.addf %11, %13 : vector<8x256xf32>
    %cst_11 = arith.constant 0.000000e+00 : f32
    %15 = vector.broadcast %cst_11 : f32 to vector<8x256xf32>
    %16 = arith.maximumf %14, %15 : vector<8x256xf32>
    %17 = arith.truncf %16 : vector<8x256xf32> to vector<8x256xbf16>
    %c0_12 = arith.constant 0 : index
    %c0_13 = arith.constant 0 : index
    %18 = vector.load %arg6[%c0_12, %c0_13] : memref<256x1xbf16, #tpu.memory_space<vmem>>, vector<256x1xbf16>
    %cst_14 = arith.constant dense<0.000000e+00> : vector<8x1xf32>
    %19 = tpu.matmul %17, %18, %cst_14 {dimension_numbers = #tpu.dot_dimension_numbers<[1], [0], [0], [1], [0, 0, 1, 1], [], []>} : vector<8x256xbf16>, vector<256x1xbf16>, vector<8x1xf32> -> vector<8x1xf32>
    %c0_15 = arith.constant 0 : index
    %c0_16 = arith.constant 0 : index
    %20 = vector.load %arg7[%c0_15, %c0_16] : memref<1x1xf32, #tpu.memory_space<vmem>>, vector<1x1xf32>
    %21 = vector.broadcast %20 : vector<1x1xf32> to vector<8x1xf32>
    %22 = arith.addf %19, %21 : vector<8x1xf32>
    %c0_17 = arith.constant 0 : index
    %c0_18 = arith.constant 0 : index
    %23 = vector.load %arg8[%c0_17, %c0_18] : memref<8x1xf32, #tpu.memory_space<vmem>>, vector<8x1xf32>
    tpu.vector_store %arg8[%c0_17, %c0_18], %22 {strides = array<i32>} : memref<8x1xf32, #tpu.memory_space<vmem>>, vector<8x1xf32>,
    return
  }
  func.func @transform_0(%arg0: i32) -> (i32, i32) {
    %c0_i32 = arith.constant 0 : i32
    %c0_i32_0 = arith.constant 0 : i32
    return %arg0, %c0_i32 : i32, i32
  }
  func.func @transform_1(%arg0: i32) -> (i32, i32) {
    %c0_i32 = arith.constant 0 : i32
    %c0_i32_0 = arith.constant 0 : i32
    %c0_i32_1 = arith.constant 0 : i32
    return %c0_i32, %c0_i32_0 : i32, i32
  }
  func.func @transform_2(%arg0: i32) -> (i32, i32) {
    %c0_i32 = arith.constant 0 : i32
    %c0_i32_0 = arith.constant 0 : i32
    %c0_i32_1 = arith.constant 0 : i32
    return %c0_i32, %c0_i32_0 : i32, i32
  }
  func.func @transform_3(%arg0: i32) -> (i32, i32) {
    %c0_i32 = arith.constant 0 : i32
    %c0_i32_0 = arith.constant 0 : i32
    %c0_i32_1 = arith.constant 0 : i32
    return %c0_i32, %c0_i32_0 : i32, i32
  }
  func.func @transform_4(%arg0: i32) -> (i32, i32) {
    %c0_i32 = arith.constant 0 : i32
    %c0_i32_0 = arith.constant 0 : i32
    %c0_i32_1 = arith.constant 0 : i32
    return %c0_i32, %c0_i32_0 : i32, i32
  }
  func.func @transform_5(%arg0: i32) -> (i32, i32) {
    %c0_i32 = arith.constant 0 : i32
    %c0_i32_0 = arith.constant 0 : i32
    %c0_i32_1 = arith.constant 0 : i32
    return %c0_i32, %c0_i32_0 : i32, i32
  }
  func.func @transform_6(%arg0: i32) -> (i32, i32) {
    %c0_i32 = arith.constant 0 : i32
    %c0_i32_0 = arith.constant 0 : i32
    %c0_i32_1 = arith.constant 0 : i32
    return %c0_i32, %c0_i32_0 : i32, i32
  }
  func.func @transform_7(%arg0: i32) -> (i32, i32) {
    %c0_i32 = arith.constant 0 : i32
    %c0_i32_0 = arith.constant 0 : i32
    return %arg0, %c0_i32 : i32, i32
  }
}

</mosaic_0001>

<bundles_post_ra>
// kernel: tpu_custom_call.1
= control target key start
LH: loop header
LB: loop body
LE: loop exit
PB: predicated region body
PF: predicated region fallthrough
CT: control target
= control target key end

     0   :  { %s843_s0 = inlined_call_operand.vmem [shape: f32[8,16], index: 0, kind: input, shape index: {}]   ;;  %s844_s1 = inlined_call_operand.vmem [shape: bf16[16,256], index: 1, kind: input, shape index: {}]   ;;  %s845_s2 = inlined_call_operand.vmem [shape: f32[1,256], index: 2, kind: input, shape index: {}]   ;;  %s846_s3 = inlined_call_operand.hbm [shape: bf16[256,256], index: 3, kind: input, shape index: {}]   ;;  %s847_s4 = inlined_call_operand.vmem [shape: f32[1,256], index: 4, kind: input, shape index: {}]   ;;  %s848_s5 = inlined_call_operand.vmem [shape: bf16[256,1], index: 5, kind: input, shape index: {}]   ;;  %s849_s6 = inlined_call_operand.<no memory space> [shape: f32[1,1], index: 6, kind: input, shape index: {}]   ;;  %s850_s7 = inlined_call_operand.vmem [shape: f32[8,1], index: 7, kind: output, shape index: {}]  }
   0x1   :  { %v12_v0 = vstv %s849_s6 }
   0x2   :  { %13 = vst [vmem:[#allocation2] sm:$0x1] %v12_v0 }
   0x3   :  { %14 = vsyncpa [#allocation4], 0  ;;  %s718_s26 = smov [#allocation3]   ;;  %s694_s30 = scalar_lea.hbm %s846_s3, 4096 }
   0x4   :  { %s26_s27 = sshll.u32 %s718_s26, 4  ;;  %p695_p0 = scmp.ne.s32.totalorder %s846_s3, %s694_s30  ;;  %s27_s27 = int_to_ptr.vmem [resolvable:$true] %s26_s27 }
   0x5   :  { %p698_p1 = scmp.lt.u32.totalorder %s694_s30, %s846_s3 }
   0x7   :  { %p700_p2 = pnand %p698_p1, %p695_p0 }
   0x9   :  { %703 = shalt.err (!%p700_p2)
}
   0xa   :  { %s704_s6 = scalar_lea.vmem %s27_s27, 4096  ;;  %p709_p4 = scmp.lt.s32.totalorder %s27_s27, %s27_s27 }
   0xb   :  { %p705_p3 = scmp.ne.s32.totalorder %s27_s27, %s704_s6  ;;  %p710_p5 = scmp.lt.s32.totalorder %s704_s6, %s704_s6 }
   0xd   :  { %p711_p6 = por %p710_p5, %p709_p4 }
   0xf   :  { %p712_p7 = pnand %p711_p6, %p705_p3 }
  0x11   :  { %715 = shalt.err (!%p712_p7)
}
  0x12   :  { %s719_s12 = smov 128   ;;  %s720_s13 = smov 8  }
  0x13   :  { %32 = dma.hbm_to_vmem [thread:$0]  %s846_s3, 4096, %s27_s27, [#allocation4], %s719_s12, %s719_s12, %s720_s13  }
  0x14   :  { %716 = dma.done.wait [#allocation4], 4096  }
  0x15   :  { %717 = vsyncadd [#allocation4], 4294963200  ;;  %v721_v1 = vmov 0   ;;  %v627_v2 = vld [vmem:[%s844_s1 + $0x4] ss:$8 sps:$4 sm:$0xff]   ;;  %vm69_vm0 = vcmask 130048   ;;  %v49_v50 = vlaneseq }
  0x16   :  { %105 = vmatprep.mubr.bf16.mxu0 %v721_v1  ;;  %v629_v3 = vld [vmem:[%s844_s1] ss:$8 sps:$4 sm:$0xff]   ;;  %73 = vmatprep.subr.bf16.mxu0 %v627_v2  ;;  %v635_v9 = vld [vmem:[#allocation3 + $0x10] ss:$8 sps:$4 sm:$0xff]   ;;  %vm542_vm1 = vcmask 7168  }
  0x17   :  { %v43_v4 = vld [vmem:[%s843_s0] sm:$0xff]  ;;  %74 = vmatpush1.bf16.msra.mxu0 %v629_v3  ;;  %v641_v13 = vld [vmem:[#allocation3 + $0x30] ss:$8 sps:$4 sm:$0xff]   ;;  %v680_v40 = vld [vmem:[%s848_s5 + $0x48] sm:$0xff]   ;;  %v50_v51 = vshrl.u32 %v49_v50, 7 }
  0x18   :  { %v44_v5 = vpack.c.bf16 %v43_v4, %v43_v4  ;;  %v630_v6 = vld [vmem:[#allocation3 + $0x4] ss:$8 sps:$4 sm:$0xff]   ;;  %v632_v7 = vld [vmem:[#allocation3] ss:$8 sps:$4 sm:$0xff]   ;;  %v633_v8 = vld [vmem:[#allocation3 + $0x14] ss:$8 sps:$4 sm:$0xff]  }
  0x19   :  { %322 = vmatprep.subr.bf16.mxu1 %v630_v6  ;;  %v636_v10 = vld [vmem:[#allocation3 + $0x24] ss:$8 sps:$4 sm:$0xff]   ;;  %v638_v11 = vld [vmem:[#allocation3 + $0x20] ss:$8 sps:$4 sm:$0xff]   ;;  %v639_v12 = vld [vmem:[#allocation3 + $0x34] ss:$8 sps:$4 sm:$0xff]  }
  0x1a   :  { %323 = vmatpush1.bf16.msra.mxu1 %v632_v7  ;;  %551 = vmatmul.mubr.msk.bf16.vlgmr.msra.gmra.mrb[0].mxu0 %vm69_vm0, %v44_v5  ;;  %v642_v14 = vld [vmem:[#allocation3 + $0x44] ss:$8 sps:$4 sm:$0xff]   ;;  %v644_v15 = vld [vmem:[#allocation3 + $0x40] ss:$8 sps:$4 sm:$0xff]   ;;  %v645_v16 = vld [vmem:[#allocation3 + $0x54] ss:$8 sps:$4 sm:$0xff]  }
  0x1b   :  { %324 = vmatprep.subr.bf16.mxu1 %v633_v8  ;;  %v647_v17 = vld [vmem:[#allocation3 + $0x50] ss:$8 sps:$4 sm:$0xff]   ;;  %v648_v18 = vld [vmem:[#allocation3 + $0x64] ss:$8 sps:$4 sm:$0xff]   ;;  %v650_v19 = vld [vmem:[#allocation3 + $0x60] ss:$8 sps:$4 sm:$0xff]  }
  0x1c   :  { %v651_v20 = vld [vmem:[#allocation3 + $0x74] ss:$8 sps:$4 sm:$0xff]   ;;  %v653_v21 = vld [vmem:[#allocation3 + $0x70] ss:$8 sps:$4 sm:$0xff]   ;;  %v654_v22 = vld [vmem:[#allocation3 + $0x84] ss:$8 sps:$4 sm:$0xff]  }
  0x1d   :  { %v656_v23 = vld [vmem:[#allocation3 + $0x80] ss:$8 sps:$4 sm:$0xff]   ;;  %v657_v24 = vld [vmem:[#allocation3 + $0x94] ss:$8 sps:$4 sm:$0xff]   ;;  %v659_v25 = vld [vmem:[#allocation3 + $0x90] ss:$8 sps:$4 sm:$0xff]  }
  0x1e   :  { %325 = vmatpush1.bf16.msra.mxu1 %v635_v9  ;;  %v660_v26 = vld [vmem:[#allocation3 + $0xa4] ss:$8 sps:$4 sm:$0xff]   ;;  %v662_v27 = vld [vmem:[#allocation3 + $0xa0] ss:$8 sps:$4 sm:$0xff]   ;;  %v663_v28 = vld [vmem:[#allocation3 + $0xb4] ss:$8 sps:$4 sm:$0xff]  }
  0x1f   :  { %326 = vmatprep.subr.bf16.mxu1 %v636_v10  ;;  %v665_v29 = vld [vmem:[#allocation3 + $0xb0] ss:$8 sps:$4 sm:$0xff]   ;;  %v666_v30 = vld [vmem:[#allocation3 + $0xc4] ss:$8 sps:$4 sm:$0xff]   ;;  %v668_v31 = vld [vmem:[#allocation3 + $0xc0] ss:$8 sps:$4 sm:$0xff]  }
  0x20   :  { %v669_v32 = vld [vmem:[#allocation3 + $0xd4] ss:$8 sps:$4 sm:$0xff]   ;;  %v671_v33 = vld [vmem:[#allocation3 + $0xd0] ss:$8 sps:$4 sm:$0xff]   ;;  %v672_v34 = vld [vmem:[#allocation3 + $0xe4] ss:$8 sps:$4 sm:$0xff]  }
  0x21   :  { %v674_v35 = vld [vmem:[#allocation3 + $0xe0] ss:$8 sps:$4 sm:$0xff]   ;;  %v675_v36 = vld [vmem:[#allocation3 + $0xf4] ss:$8 sps:$4 sm:$0xff]   ;;  %v677_v37 = vld [vmem:[#allocation3 + $0xf0] ss:$8 sps:$4 sm:$0xff]  }
  0x22   :  { %327 = vmatpush1.bf16.msra.mxu1 %v638_v11  ;;  %v678_v38 = vld [vmem:[%s848_s5 + $0x40] sm:$0xff]   ;;  %v681_v41 = vld [vmem:[%s848_s5 + $0x8] sm:$0xff]   ;;  %v682_v42 = vld [vmem:[%s848_s5 + $0x50] sm:$0xff]   ;;  %v51_v52 = vsub.s32 0, %v50_v51  ;;  %v55_v54 = vsub.s32 1, %v50_v51 }
  0x23   :  { %328 = vmatprep.subr.bf16.mxu1 %v639_v12  ;;  %v679_v39 = vld [vmem:[%s848_s5] sm:$0xff]   ;;  %601 = vmatprep.subr.bf16.mxu0 %v678_v38  ;;  %v683_v43 = vld [vmem:[%s848_s5 + $0x10] sm:$0xff]   ;;  %v684_v44 = vld [vmem:[%s848_s5 + $0x58] sm:$0xff]  }
  0x24   :  { %602 = vmatpush3.bf16.msra.mxu0 %v679_v39  ;;  %v685_v45 = vld [vmem:[%s848_s5 + $0x18] sm:$0xff]   ;;  %v686_v46 = vld [vmem:[%s848_s5 + $0x60] sm:$0xff]   ;;  %v688_v48 = vld [vmem:[%s848_s5 + $0x68] sm:$0xff]  }
  0x25   :  { %603 = vmatprep.subr.bf16.mxu0 %v680_v40  ;;  %v687_v47 = vld [vmem:[%s848_s5 + $0x20] sm:$0xff]   ;;  %v689_v49 = vld [vmem:[%s848_s5 + $0x28] sm:$0xff]   ;;  %v690_v3 = vld [vmem:[%s848_s5 + $0x70] sm:$0xff]  }
  0x26   :  { %329 = vmatpush1.bf16.msra.mxu1 %v641_v13  ;;  %v47_v53 = vld [vmem:[%s845_s2] sm:$0x3]  ;;  %v691_v4 = vld [vmem:[%s848_s5 + $0x30] sm:$0xff]   ;;  %v692_v5 = vld [vmem:[%s848_s5 + $0x78] sm:$0xff]  }
  0x27   :  { %330 = vmatprep.subr.bf16.mxu1 %v642_v14  ;;  %v52_v55 = vrot.slane %v47_v53, %v51_v52  ;;  %v56_v56 = vrot.slane %v47_v53, %v55_v54  ;;  %v693_v6 = vld [vmem:[%s848_s5 + $0x38] sm:$0xff]   ;;  %v150_v7 = vld [vmem:[%s847_s4] sm:$0x3] }
  0x28   :  { %604 = vmatpush3.bf16.msra.mxu0 %v681_v41  ;;  %v155_v8 = vrot.slane %v150_v7, %v51_v52  ;;  %v159_v9 = vrot.slane %v150_v7, %v55_v54 }
  0x29   :  { %605 = vmatprep.subr.bf16.mxu0 %v682_v42 }
  0x2a   :  { %331 = vmatpush1.bf16.msra.mxu1 %v644_v15 }
  0x2b   :  { %332 = vmatprep.subr.bf16.mxu1 %v645_v16 }
  0x2c   :  { %606 = vmatpush3.bf16.msra.mxu0 %v683_v43 }
  0x2d   :  { %607 = vmatprep.subr.bf16.mxu0 %v684_v44 }
  0x2e   :  { %333 = vmatpush1.bf16.msra.mxu1 %v647_v17 }
  0x2f   :  { %334 = vmatprep.subr.bf16.mxu1 %v648_v18 }
  0x30   :  { %608 = vmatpush3.bf16.msra.mxu0 %v685_v45 }
  0x31   :  { %609 = vmatprep.subr.bf16.mxu0 %v686_v46 }
  0x32   :  { %335 = vmatpush1.bf16.msra.mxu1 %v650_v19 }
  0x33   :  { %336 = vmatprep.subr.bf16.mxu1 %v651_v20 }
  0x34   :  { %610 = vmatpush3.bf16.msra.mxu0 %v687_v47 }
  0x35   :  { %611 = vmatprep.subr.bf16.mxu0 %v688_v48 }
  0x36   :  { %337 = vmatpush1.bf16.msra.mxu1 %v653_v21  ;;  %v584_v21 = vld [vmem:[#allocation2] ss:$0 sm:$0xff] }
  0x37   :  { %338 = vmatprep.subr.bf16.mxu1 %v654_v22 }
  0x38   :  { %612 = vmatpush3.bf16.msra.mxu0 %v689_v49 }
  0x39   :  { %613 = vmatprep.subr.bf16.mxu0 %v690_v3 }
  0x3a   :  { %339 = vmatpush1.bf16.msra.mxu1 %v656_v23 }
  0x3b   :  { %340 = vmatprep.subr.bf16.mxu1 %v657_v24 }
  0x3c   :  { %614 = vmatpush3.bf16.msra.mxu0 %v691_v4 }
  0x3d   :  { %615 = vmatprep.subr.bf16.mxu0 %v692_v5 }
  0x3e   :  { %341 = vmatpush1.bf16.msra.mxu1 %v659_v25 }
  0x3f   :  { %342 = vmatprep.subr.bf16.mxu1 %v660_v26 }
  0x40   :  { %616 = vmatpush3.bf16.msra.mxu0 %v693_v6 }
  0x42   :  { %343 = vmatpush1.bf16.msra.mxu1 %v662_v27 }
  0x43   :  { %344 = vmatprep.subr.bf16.mxu1 %v663_v28 }
  0x46   :  { %345 = vmatpush1.bf16.msra.mxu1 %v665_v29 }
  0x47   :  { %346 = vmatprep.subr.bf16.mxu1 %v666_v30 }
  0x4a   :  { %347 = vmatpush1.bf16.msra.mxu1 %v668_v31 }
  0x4b   :  { %348 = vmatprep.subr.bf16.mxu1 %v669_v32 }
  0x4e   :  { %349 = vmatpush1.bf16.msra.mxu1 %v671_v33 }
  0x4f   :  { %350 = vmatprep.subr.bf16.mxu1 %v672_v34 }
  0x52   :  { %351 = vmatpush1.bf16.msra.mxu1 %v674_v35 }
  0x53   :  { %352 = vmatprep.subr.bf16.mxu1 %v675_v36 }
  0x56   :  { %353 = vmatpush1.bf16.msra.mxu1 %v677_v37 }
  0xed   :  { %v107_v57 = vpop.f32.mrb[0].mxu0 }
  0xee   :  { %v108_v58 = vadd.f32 %v107_v57, %v52_v55  ;;  %v109_v59 = vpop.f32.mrb[1].mxu0 }
  0xef   :  { %v110_v60 = vadd.f32 %v109_v59, %v56_v56  ;;  %v111_v61 = vpop.f32.mrb[2].mxu0 }
  0xf0   :  { %v114_v62 = vmax.f32 %v108_v58, 0.0  ;;  %v112_v63 = vpop.f32.mrb[3].mxu0 }
  0xf1   :  { %v115_v0 = vmax.f32 %v110_v60, 0.0 }
  0xf2   :  { %v116_v2 = vpack.c.bf16 %v114_v62, %v114_v62 }
  0xf3   :  { %v117_v1 = vpack.c.bf16 %v115_v0, %v115_v0 }
  0xf5   :  { %354 = vmatprep.mubr.bf16.mxu1 %v117_v1 }
  0xf6   :  { %355 = vmatmul.mubr.bf16.vlgmr.msra.gmra.mrb[0].mxu1 %v116_v2 }
 0x1c9   :  { %v356_v10 = vpop.f32.mrb[0].mxu1 }
 0x1ca   :  { %v357_v11 = vadd.f32 %v356_v10, %v155_v8  ;;  %v358_v12 = vpop.f32.mrb[1].mxu1 }
 0x1cb   :  { %v359_v13 = vadd.f32 %v358_v12, %v159_v9  ;;  %v360_v14 = vpop.f32.mrb[2].mxu1 }
 0x1cc   :  { %v363_v15 = vmax.f32 %v357_v11, 0.0  ;;  %v361_v16 = vpop.f32.mrb[3].mxu1 }
 0x1cd   :  { %v364_v17 = vmax.f32 %v359_v13, 0.0 }
 0x1ce   :  { %v365_v19 = vpack.c.bf16 %v363_v15, %v363_v15 }
 0x1cf   :  { %v366_v18 = vpack.c.bf16 %v364_v17, %v364_v17 }
 0x1d1   :  { %534 = vmatprep.mubr.bf16.mxu0 %v366_v18 }
 0x1d2   :  { %535 = vmatmul.mubr.bf16.vlgmr.msra.gmra.mrb[4].mxu0 %v365_v19 }
 0x2a5   :  { %v617_v20 = vpop.f32.mrb[4].mxu0 }
 0x2a6   :  { %v618_v22 = vpop.f32.mrb[5].mxu0 }
 0x2a7   :  { %v619_v23 = vadd.f32 %v618_v22, %v617_v20  ;;  %v620_v24 = vpop.f32.mrb[6].mxu0 }
 0x2a8   :  { %v621_v25 = vpop.f32.mrb[7].mxu0 }
 0x2a9   :  { %v537_v26 = vadd.f32 %v619_v23, %v584_v21 }
 0x2ab   :  { %543 = vst.msk [vmem:[%s850_s7] sm:$0xff] %vm542_vm1, %v537_v26 }
 0x2ac   :  { %548 = vsyncpa [#allocation4], 1 }

</bundles_post_ra>
